<compile_context>
chip_gen: v7x
topology: tpu7x:2x2x1
jax: 0.10.0
libtpu: 0.0.40
codegen_flags: <defaults>
</compile_context>

<pallas_src>
import numpy as np

import jax
import jax.numpy as jnp
from jax.experimental import pallas as pl
from jax.experimental.pallas import tpu as pltpu

_LANES = 128
_SUBLANES = 8
_MAX_TILE_ROWS = 1024  # 1024 x 128 f32 block = 512 KiB (x2 for double buffering)


def _fused_weighted_sq_sum_kernel(x_ref, w_ref, o_ref, acc_ref):
    """Accumulate sum(w * x^2) per (sublane, lane); emit (8,128) partials on last step."""
    i = pl.program_id(1)

    @pl.when(i == 0)
    def _():
        acc_ref[...] = jnp.zeros_like(acc_ref)

    xf = x_ref[...].astype(jnp.float32)          # per-tile upcast (VPU; hidden by DMA)
    acc_ref[...] += (xf * xf) * w_ref[...]       # (tile_r,128) * (tile_r,1) lane-broadcast

    @pl.when(i == pl.num_programs(1) - 1)
    def _():
        # One-time sublane fold of the wide accumulator down to a single (8,128) block.
        tile_r = acc_ref.shape[0]
        folded = acc_ref[0:_SUBLANES, :]
        for r in range(1, tile_r // _SUBLANES):  # static unroll; runs once per chunk
            folded = folded + acc_ref[r * _SUBLANES:(r + 1) * _SUBLANES, :]
        o_ref[...] = folded


def fused_sq_mean_sum(tensors):
    """sum_i mean(t_i ** 2) over a list of arrays, computed in ONE Pallas kernel."""
    tensors = list(tensors)
    assert tensors, "expected at least one discriminator output"
    dt = jnp.result_type(*[t.dtype for t in tensors])

    pieces = []
    row_weights = []
    total_rows = 0
    for t in tensors:
        n = int(t.size)
        rows = -(-n // _LANES)                   # ceil-div
        pad = rows * _LANES - n
        pieces.append(jnp.ravel(t).astype(dt))
        if pad:
            pieces.append(jnp.zeros((pad,), dt))  # zero pad contributes 0 to sum(x^2)
        row_weights.append(np.full((rows,), 1.0 / n, dtype=np.float32))
        total_rows += rows

    # Tile / grid geometry (all static Python ints).
    tile_r = min(_MAX_TILE_ROWS,
                 ((total_rows + _SUBLANES - 1) // _SUBLANES) * _SUBLANES)
    total_tiles = -(-total_rows // tile_r)
    num_chunks = 2 if total_tiles >= 2 else 1     # lets v7x megacore split the reduction
    steps = -(-total_tiles // num_chunks)
    rows_padded = num_chunks * steps * tile_r

    tail_rows = rows_padded - total_rows
    if tail_rows:
        pieces.append(jnp.zeros((tail_rows * _LANES,), dt))
        row_weights.append(np.zeros((tail_rows,), dtype=np.float32))

    # Single concat builds the lane-dense slab directly at its final padded size
    # (no separate full-array jnp.pad / astype passes).
    x2d = jnp.concatenate(pieces).reshape(rows_padded, _LANES)
    w2d = jnp.asarray(np.concatenate(row_weights).reshape(rows_padded, 1))

    partials = pl.pallas_call(
        _fused_weighted_sq_sum_kernel,
        out_shape=jax.ShapeDtypeStruct((num_chunks * _SUBLANES, _LANES), jnp.float32),
        grid=(num_chunks, steps),
        in_specs=[
            pl.BlockSpec((tile_r, _LANES), lambda c, i: (c * steps + i, 0)),
            pl.BlockSpec((tile_r, 1), lambda c, i: (c * steps + i, 0)),
        ],
        out_specs=pl.BlockSpec((_SUBLANES, _LANES), lambda c, i: (c, 0)),
        scratch_shapes=[pltpu.VMEM((tile_r, _LANES), jnp.float32)],
        compiler_params=pltpu.CompilerParams(
            dimension_semantics=("parallel", "arbitrary"),
            vmem_limit_bytes=32 * 1024 * 1024,
        ),
    )(x2d, w2d)

    # Tiny final cross-lane/cross-chunk reduction (num_chunks*8*128 values) in XLA.
    return jnp.sum(partials)


def discriminator_loss(d_outs_generated):
    """sum_i mean(d_i ** 2) over the list of sub-discriminator outputs."""
    return fused_sq_mean_sum(d_outs_generated)


def d_loss(mpd_d_out_generated, msd_d_out_generated, **batch):
    """Forward pass of DLoss: adv_loss(mpd) + adv_loss(msd), fully fused into one kernel."""
    return fused_sq_mean_sum(list(mpd_d_out_generated) + list(msd_d_out_generated))


def _reference(mpd, msd):
    tot = jnp.float32(0.0)
    for d in list(mpd) + list(msd):
        tot = tot + jnp.mean(jnp.asarray(d, jnp.float32) ** 2)
    return tot


if __name__ == "__main__":
    key = jax.random.PRNGKey(0)
    k1, k2, k3, k4, k5 = jax.random.split(key, 5)
    # MPD-style sub-discriminator outputs (B, C=1, T', period) and
    # MSD-style sub-discriminator outputs (B, C=1, T').
    mpd_d_out_generated = [
        jax.random.normal(k1, (2, 1, 16, 16), jnp.float32),
        jax.random.normal(k2, (2, 1, 12, 8), jnp.float32),
        jax.random.normal(k3, (2, 1, 10, 4), jnp.float32),
    ]
    msd_d_out_generated = [
        jax.random.normal(k4, (2, 1, 64), jnp.float32),
        jax.random.normal(k5, (2, 1, 32), jnp.float32),
    ]

    out = d_loss(mpd_d_out_generated, msd_d_out_generated)
    out = jax.block_until_ready(out)

    ref = _reference(mpd_d_out_generated, msd_d_out_generated)
    assert jnp.allclose(out, ref, rtol=1e-5, atol=1e-5), (out, ref)

    print("KERNEL_OK")
</pallas_src>

<mosaic_0001>
module attributes {stable_mosaic.version = 11 : i64} {
  func.func @_fused_weighted_sq_sum_kernel(%arg0: i32, %arg1: i32, %arg2: memref<16x128xf32, #tpu.memory_space<vmem>>, %arg3: memref<16x1xf32, #tpu.memory_space<vmem>>, %arg4: memref<8x128xf32, #tpu.memory_space<vmem>>, %arg5: memref<16x128xf32, #tpu.memory_space<vmem>>) attributes {dimension_semantics = [#tpu.dimension_semantics<parallel>, #tpu.dimension_semantics<arbitrary>], iteration_bounds = array<i64: 1, 1>, scalar_prefetch = 0 : i64, scratch_operands = 1 : i64, tpu.core_type = #tpu.core_type<tc>, window_params = [{transform_indices = @transform_0, window_bounds = array<i64: 16, 128>}, {transform_indices = @transform_1, window_bounds = array<i64: 16, 1>}, {transform_indices = @transform_2, window_bounds = array<i64: 8, 128>}]} {
    %c0_i32 = arith.constant 0 : i32
    %0 = arith.cmpi eq, %arg1, %c0_i32 : i32
    %1 = arith.extui %0 : i1 to i32
    %c0_i32_0 = arith.constant 0 : i32
    %2 = arith.cmpi ne, %1, %c0_i32_0 : i32
    scf.if %2 {
      %cst = arith.constant 0.000000e+00 : f32
      %14 = vector.broadcast %cst : f32 to vector<16x128xf32>
      %c0_10 = arith.constant 0 : index
      %c0_11 = arith.constant 0 : index
      %15 = vector.load %arg5[%c0_10, %c0_11] : memref<16x128xf32, #tpu.memory_space<vmem>>, vector<16x128xf32>
      tpu.vector_store %arg5[%c0_10, %c0_11], %14 {strides = array<i32>} : memref<16x128xf32, #tpu.memory_space<vmem>>, vector<16x128xf32>,
    } else {
    }
    %c0 = arith.constant 0 : index
    %c0_1 = arith.constant 0 : index
    %3 = vector.load %arg2[%c0, %c0_1] : memref<16x128xf32, #tpu.memory_space<vmem>>, vector<16x128xf32>
    %c0_2 = arith.constant 0 : index
    %c0_3 = arith.constant 0 : index
    %4 = vector.load %arg5[%c0_2, %c0_3] : memref<16x128xf32, #tpu.memory_space<vmem>>, vector<16x128xf32>
    %5 = arith.mulf %3, %3 : vector<16x128xf32>
    %c0_4 = arith.constant 0 : index
    %c0_5 = arith.constant 0 : index
    %6 = vector.load %arg3[%c0_4, %c0_5] : memref<16x1xf32, #tpu.memory_space<vmem>>, vector<16x1xf32>
    %7 = vector.broadcast %6 : vector<16x1xf32> to vector<16x128xf32>
    %8 = arith.mulf %5, %7 : vector<16x128xf32>
    %9 = arith.addf %4, %8 : vector<16x128xf32>
    %c0_6 = arith.constant 0 : index
    %c0_7 = arith.constant 0 : index
    %10 = vector.load %arg5[%c0_6, %c0_7] : memref<16x128xf32, #tpu.memory_space<vmem>>, vector<16x128xf32>
    tpu.vector_store %arg5[%c0_6, %c0_7], %9 {strides = array<i32>} : memref<16x128xf32, #tpu.memory_space<vmem>>, vector<16x128xf32>,
    %c0_i32_8 = arith.constant 0 : i32
    %11 = arith.cmpi eq, %arg1, %c0_i32_8 : i32
    %12 = arith.extui %11 : i1 to i32
    %c0_i32_9 = arith.constant 0 : i32
    %13 = arith.cmpi ne, %12, %c0_i32_9 : i32
    scf.if %13 {
      %c0_10 = arith.constant 0 : index
      %c0_11 = arith.constant 0 : index
      %14 = vector.load %arg5[%c0_10, %c0_11] : memref<16x128xf32, #tpu.memory_space<vmem>>, vector<8x128xf32>
      %c8 = arith.constant 8 : index
      %c0_12 = arith.constant 0 : index
      %15 = vector.load %arg5[%c8, %c0_12] : memref<16x128xf32, #tpu.memory_space<vmem>>, vector<8x128xf32>
      %16 = arith.addf %14, %15 : vector<8x128xf32>
      %c0_13 = arith.constant 0 : index
      %c0_14 = arith.constant 0 : index
      %17 = vector.load %arg4[%c0_13, %c0_14] : memref<8x128xf32, #tpu.memory_space<vmem>>, vector<8x128xf32>
      tpu.vector_store %arg4[%c0_13, %c0_14], %16 {strides = array<i32>} : memref<8x128xf32, #tpu.memory_space<vmem>>, vector<8x128xf32>,
    } else {
    }
    return
  }
  func.func @transform_0(%arg0: i32, %arg1: i32) -> (i32, i32) {
    %c1_i32 = arith.constant 1 : i32
    %0 = arith.muli %arg0, %c1_i32 : i32
    %1 = arith.addi %0, %arg1 : i32
    %c0_i32 = arith.constant 0 : i32
    %c0_i32_0 = arith.constant 0 : i32
    return %1, %c0_i32 : i32, i32
  }
  func.func @transform_1(%arg0: i32, %arg1: i32) -> (i32, i32) {
    %c1_i32 = arith.constant 1 : i32
    %0 = arith.muli %arg0, %c1_i32 : i32
    %1 = arith.addi %0, %arg1 : i32
    %c0_i32 = arith.constant 0 : i32
    %c0_i32_0 = arith.constant 0 : i32
    return %1, %c0_i32 : i32, i32
  }
  func.func @transform_2(%arg0: i32, %arg1: i32) -> (i32, i32) {
    %c0_i32 = arith.constant 0 : i32
    %c0_i32_0 = arith.constant 0 : i32
    return %arg0, %c0_i32 : i32, i32
  }
}

</mosaic_0001>

<bundles_post_ra>
// kernel: tpu_custom_call.1
= control target key start
LH: loop header
LB: loop body
LE: loop exit
PB: predicated region body
PF: predicated region fallthrough
CT: control target
= control target key end

     0   :  { %v146_v1 = vmov 0   ;;  %s187_s0 = inlined_call_operand.vmem [shape: f32[16,128], index: 0, kind: input, shape index: {}]   ;;  %s188_s1 = inlined_call_operand.vmem [shape: f32[16,1], index: 1, kind: input, shape index: {}]   ;;  %s189_s2 = inlined_call_operand.hbm [shape: f32[8,128], index: 2, kind: output, shape index: {}]  }
   0x1   :  { %v68_v0 = vld [vmem:[%s188_s1] sm:$0xff]  ;;  %121 = vset.pattern.permute.xlu0 %v146_v1 }
   0x2   :  { %7 = vsyncpa [#allocation4], 0  ;;  %72 = vperm.xlu0 %121, %v68_v0   ;;  %v69_v2 = vld [vmem:[%s188_s1 + $0x8] sm:$0xff]  ;;  %v62_v3 = vld [vmem:[%s187_s0] sm:$0xff]  ;;  %s147_s17 = smov [#allocation3]  }
   0x3   :  { %v63_v4 = vld [vmem:[%s187_s0 + $0x8] sm:$0xff]  ;;  %v66_v6 = vmul.f32 %v62_v3, %v62_v3  ;;  %s99_s18 = sshll.u32 %s147_s17, 4  ;;  %s100_s18 = int_to_ptr.vmem [resolvable:$true] %s99_s18 }
   0x4   :  { %v67_v7 = vmul.f32 %v63_v4, %v63_v4  ;;  %s122_s1 = scalar_lea.vmem %s100_s18, 128  ;;  %p127_p1 = scmp.lt.s32.totalorder %s100_s18, %s100_s18 }
   0x5   :  { %p123_p0 = scmp.ne.s32.totalorder %s100_s18, %s122_s1  ;;  %p128_p2 = scmp.lt.s32.totalorder %s122_s1, %s122_s1 }
   0x6   :  { %77 = vperm.xlu0 %121, %v69_v2  }
   0x7   :  { %p129_p3 = por %p128_p2, %p127_p1 }
   0x9   :  { %p130_p4 = pnand %p129_p3, %p123_p0 }
  0x81   :  { %v73_v5 = vpop.permute.xlu0 %72 }
  0x82   :  { %v80_v9 = vmul.f32 %v73_v5, %v66_v6 }
  0x85   :  { %v78_v8 = vpop.permute.xlu0 %77 }
  0x86   :  { %v81_v10 = vmul.f32 %v78_v8, %v67_v7 }
  0x88   :  { %v91_v11 = vadd.f32 %v81_v10, %v80_v9 }
  0x8a   :  { %92 = vst [vmem:[#allocation3] sm:$0xff] %v91_v11 }
  0x8b   :  { %133 = shalt.err (!%p130_p4)
}
  0x8c   :  { %s134_s20 = scalar_lea.hbm %s189_s2, 128 }
  0x8d   :  { %p135_p5 = scmp.ne.s32.totalorder %s189_s2, %s134_s20  ;;  %p138_p6 = scmp.lt.u32.totalorder %s134_s20, %s189_s2 }
  0x8f   :  { %p140_p7 = pnand %p138_p6, %p135_p5 }
  0x91   :  { %143 = shalt.err (!%p140_p7)
}
  0x92   :  { %102 = dma.vmem_to_hbm [thread:$0]  %s100_s18, 128, %s189_s2, [#allocation4]  }
  0x93   :  { %144 = dma.done.wait [#allocation4], 128  }
  0x94   :  { %145 = vsyncadd [#allocation4], 4294967168 }
  0x95   :  { %106 = vsyncpa [#allocation4], 1 }

</bundles_post_ra>
